<compile_context>
chip_gen: v7x
topology: tpu7x:2x2x1
jax: 0.10.0
libtpu: 0.0.40
codegen_flags: <defaults>
</compile_context>

<pallas_src>
import math
import functools

import jax
import jax.numpy as jnp
from jax.experimental import pallas as pl
from jax.experimental.pallas import tpu as pltpu


def _round_up(x, m):
    return ((x + m - 1) // m) * m


def _pick_tile_e(E, H, itemsize):
    """Pick an edge-tile size: as big as possible while keeping double-buffered
    VMEM usage ~<= 12 MiB (fits v7x's 64 MiB VMEM with lots of headroom)."""
    budget = 12 * 1024 * 1024
    per_edge = 4 * H * itemsize + 4 + 4      # 4 gathered inputs + edge_type + output
    max_tile = max(128, (budget // (2 * per_edge)) // 128 * 128)
    tile = min(4096, max_tile)
    # Don't over-pad tiny edge lists.
    tile = min(tile, _round_up(max(E, 1), 128))
    return max(128, tile)


def _vmem_limit_bytes(H, tile_e, r_pad, itemsize):
    per_step = 4 * H * tile_e * itemsize + tile_e * 4 + tile_e * 4
    rel_bytes = 2 * H * r_pad * itemsize
    need = 2 * per_step + 2 * rel_bytes      # double-buffered inputs/outputs + rel tables
    # Clamp so we never ask for more than v7x's physical 64 MiB.
    return int(min(64 * 1024 * 1024, max(32 * 1024 * 1024, 2 * need)))


def _complex_score_kernel(et_ref, hr_ref, hi_ref, tr_ref, ti_ref,
                          rel_real_ref, rel_imag_ref, out_ref):
    """ComplEx score for one edge tile (H-major layout).

    et_ref              : (1, TE)  int32  relation id per edge
    hr/hi/tr/ti refs    : (H, TE)         gathered node embeddings, real/imag halves
    rel_real/imag refs  : (H, Rp)         relation tables (transposed, lane-padded),
                                          VMEM-resident across the whole grid
    out_ref             : (1, TE)  f32    per-edge score (lane-dense)
    """
    r_pad = rel_real_ref.shape[1]
    te = et_ref.shape[1]

    # One-hot selection matrix (Rp, TE): the relation "gather" becomes a tiny
    # MXU matmul, so no (E, H) relation gather ever touches HBM.
    rel_ids = jax.lax.broadcasted_iota(jnp.int32, (r_pad, te), 0)
    one_hot = (rel_ids == et_ref[...]).astype(jnp.float32)

    rel_real = jnp.dot(rel_real_ref[...].astype(jnp.float32), one_hot,
                       precision=jax.lax.Precision.HIGHEST,
                       preferred_element_type=jnp.float32)          # (H, TE)
    rel_imag = jnp.dot(rel_imag_ref[...].astype(jnp.float32), one_hot,
                       precision=jax.lax.Precision.HIGHEST,
                       preferred_element_type=jnp.float32)          # (H, TE)

    hr = hr_ref[...].astype(jnp.float32)
    hi = hi_ref[...].astype(jnp.float32)
    tr = tr_ref[...].astype(jnp.float32)
    ti = ti_ref[...].astype(jnp.float32)

    score = (hr * rel_real - hi * rel_imag) * tr \
          + (hr * rel_imag + hi * rel_real) * ti                    # (H, TE)

    # Sublane (H-axis) reduction -> lane-dense (1, TE) output row.
    out_ref[...] = jnp.sum(score, axis=0, keepdims=True)


@functools.partial(jax.jit, static_argnames=("tile_e",))
def _complex_forward_impl(z, edge_index, edge_type, rel_emb, rel_emb_imag, *, tile_e):
    R, H = rel_emb.shape
    E = edge_index.shape[1]
    assert z.shape[1] == 2 * H, "z must have 2*hidden_channels features"

    itemsize = jnp.dtype(z.dtype).itemsize

    e_pad = _round_up(max(E, 1), tile_e)
    pad = e_pad - E

    src = jnp.pad(edge_index[0], (0, pad)).astype(jnp.int32)
    dst = jnp.pad(edge_index[1], (0, pad)).astype(jnp.int32)
    et = jnp.pad(edge_type, (0, pad)).astype(jnp.int32).reshape(1, e_pad)

    # --- glue: node gather + real/imag split + transpose to H-major (H, E_pad) ---
    head = jnp.take(z, src, axis=0)          # (E_pad, 2H)
    tail = jnp.take(z, dst, axis=0)          # (E_pad, 2H)
    head_real = head[:, :H].T                # (H, E_pad)
    head_imag = head[:, H:].T
    tail_real = tail[:, :H].T
    tail_imag = tail[:, H:].T

    # Relation tables: transpose to (H, R) and pad R up to a sublane multiple.
    r_pad = max(8, _round_up(R, 8))
    rel_real_t = jnp.pad(rel_emb.T, ((0, 0), (0, r_pad - R)))        # (H, Rp)
    rel_imag_t = jnp.pad(rel_emb_imag.T, ((0, 0), (0, r_pad - R)))   # (H, Rp)

    grid = (e_pad // tile_e,)

    out = pl.pallas_call(
        _complex_score_kernel,
        out_shape=jax.ShapeDtypeStruct((1, e_pad), jnp.float32),
        grid_spec=pltpu.PrefetchScalarGridSpec(
            num_scalar_prefetch=0,
            grid=grid,
            in_specs=[
                pl.BlockSpec((1, tile_e), lambda i: (0, i)),   # edge_type
                pl.BlockSpec((H, tile_e), lambda i: (0, i)),   # head_real
                pl.BlockSpec((H, tile_e), lambda i: (0, i)),   # head_imag
                pl.BlockSpec((H, tile_e), lambda i: (0, i)),   # tail_real
                pl.BlockSpec((H, tile_e), lambda i: (0, i)),   # tail_imag
                pl.BlockSpec((H, r_pad), lambda i: (0, 0)),    # rel_real (VMEM-resident)
                pl.BlockSpec((H, r_pad), lambda i: (0, 0)),    # rel_imag (VMEM-resident)
            ],
            out_specs=pl.BlockSpec((1, tile_e), lambda i: (0, i)),
        ),
        compiler_params=pltpu.CompilerParams(
            dimension_semantics=("parallel",),
            vmem_limit_bytes=_vmem_limit_bytes(H, tile_e, r_pad, itemsize),
        ),
    )(et, head_real, head_imag, tail_real, tail_imag, rel_real_t, rel_imag_t)

    return out[0, :E]   # (E,)


def complex_forward(z, edge_index, edge_type, rel_emb, rel_emb_imag, *, tile_e=None):
    """ComplEx.forward: returns (E,) scores."""
    E = int(edge_index.shape[1])
    H = int(rel_emb.shape[1])
    if tile_e is None:
        tile_e = _pick_tile_e(E, H, jnp.dtype(z.dtype).itemsize)
    tile_e = max(128, _round_up(int(tile_e), 128))
    return _complex_forward_impl(z, edge_index, edge_type, rel_emb, rel_emb_imag,
                                 tile_e=tile_e)


def _xavier_uniform(key, shape, dtype=jnp.float32):
    """Match torch.nn.init.xavier_uniform_ for a 2-D tensor (gain=1)."""
    fan_out, fan_in = shape[0], shape[1]
    bound = math.sqrt(6.0 / (fan_in + fan_out))
    return jax.random.uniform(key, shape, dtype=dtype, minval=-bound, maxval=bound)


if __name__ == "__main__":
    # Small deterministic example shapes (E not a tile multiple -> exercises padding).
    hidden_channels = 32        # H
    num_relations = 5           # R
    num_nodes = 64              # N
    num_edges = 50              # E

    key = jax.random.PRNGKey(0)
    k_z, k_rr, k_ri, k_src, k_dst, k_rel = jax.random.split(key, 6)

    # Node embeddings (produced by an upstream encoder in the original model).
    z = jax.random.normal(k_z, (num_nodes, 2 * hidden_channels), dtype=jnp.float32)

    # Parameters (deterministic xavier_uniform init, as in reset_parameters()).
    rel_emb = _xavier_uniform(k_rr, (num_relations, hidden_channels))
    rel_emb_imag = _xavier_uniform(k_ri, (num_relations, hidden_channels))

    # Edge index / edge types.
    src = jax.random.randint(k_src, (num_edges,), 0, num_nodes, dtype=jnp.int32)
    dst = jax.random.randint(k_dst, (num_edges,), 0, num_nodes, dtype=jnp.int32)
    edge_index = jnp.stack([src, dst], axis=0)                      # (2, E)
    edge_type = jax.random.randint(k_rel, (num_edges,), 0, num_relations, dtype=jnp.int32)

    scores = complex_forward(z, edge_index, edge_type, rel_emb, rel_emb_imag)
    scores = jax.block_until_ready(scores)

    # Pure-JAX reference for a quiet correctness check.
    head = z[edge_index[0]]
    tail = z[edge_index[1]]
    hr, hi = jnp.split(head, 2, axis=-1)
    tr, ti = jnp.split(tail, 2, axis=-1)
    rr = rel_emb[edge_type]
    ri = rel_emb_imag[edge_type]
    ref = jnp.sum((hr * rr - hi * ri) * tr + (hr * ri + hi * rr) * ti, axis=-1)
    assert scores.shape == (num_edges,)
    assert jnp.allclose(scores, ref, atol=1e-4, rtol=1e-4), float(jnp.max(jnp.abs(scores - ref)))

    print("KERNEL_OK")
</pallas_src>

<mosaic_0001>
module attributes {stable_mosaic.version = 11 : i64} {
  func.func @_complex_score_kernel(%arg0: i32, %arg1: memref<1x128xi32, #tpu.memory_space<vmem>>, %arg2: memref<32x128xf32, #tpu.memory_space<vmem>>, %arg3: memref<32x128xf32, #tpu.memory_space<vmem>>, %arg4: memref<32x128xf32, #tpu.memory_space<vmem>>, %arg5: memref<32x128xf32, #tpu.memory_space<vmem>>, %arg6: memref<32x8xf32, #tpu.memory_space<vmem>>, %arg7: memref<32x8xf32, #tpu.memory_space<vmem>>, %arg8: memref<1x128xf32, #tpu.memory_space<vmem>>) attributes {dimension_semantics = [#tpu.dimension_semantics<parallel>], iteration_bounds = array<i64: 1>, scalar_prefetch = 0 : i64, scratch_operands = 0 : i64, tpu.core_type = #tpu.core_type<tc>, window_params = [{transform_indices = @transform_0, window_bounds = array<i64: 1, 128>}, {transform_indices = @transform_1, window_bounds = array<i64: 32, 128>}, {transform_indices = @transform_2, window_bounds = array<i64: 32, 128>}, {transform_indices = @transform_3, window_bounds = array<i64: 32, 128>}, {transform_indices = @transform_4, window_bounds = array<i64: 32, 128>}, {pipeline_mode = #tpu.pipeline_mode<synchronous>, transform_indices = @transform_5, window_bounds = array<i64: 32, 8>}, {pipeline_mode = #tpu.pipeline_mode<synchronous>, transform_indices = @transform_6, window_bounds = array<i64: 32, 8>}, {transform_indices = @transform_7, window_bounds = array<i64: 1, 128>}]} {
    %0 = tpu.iota {dimensions = array<i32: 0>} : vector<8x128xi32>
    %c0 = arith.constant 0 : index
    %c0_0 = arith.constant 0 : index
    %1 = vector.load %arg1[%c0, %c0_0] : memref<1x128xi32, #tpu.memory_space<vmem>>, vector<1x128xi32>
    %2 = vector.broadcast %1 : vector<1x128xi32> to vector<8x128xi32>
    %3 = arith.cmpi eq, %0, %2 : vector<8x128xi32>
    %4 = arith.extui %3 : vector<8x128xi1> to vector<8x128xi32>
    %5 = arith.sitofp %4 : vector<8x128xi32> to vector<8x128xf32>
    %c0_1 = arith.constant 0 : index
    %c0_2 = arith.constant 0 : index
    %6 = vector.load %arg6[%c0_1, %c0_2] : memref<32x8xf32, #tpu.memory_space<vmem>>, vector<32x8xf32>
    %cst = arith.constant dense<0.000000e+00> : vector<32x128xf32>
    %7 = tpu.matmul %6, %5, %cst {dimension_numbers = #tpu.dot_dimension_numbers<[1], [0], [0], [1], [0, 0, 1, 1], [], []>, precision = #tpu.contract_precision<fp32>} : vector<32x8xf32>, vector<8x128xf32>, vector<32x128xf32> -> vector<32x128xf32>
    %c0_3 = arith.constant 0 : index
    %c0_4 = arith.constant 0 : index
    %8 = vector.load %arg7[%c0_3, %c0_4] : memref<32x8xf32, #tpu.memory_space<vmem>>, vector<32x8xf32>
    %cst_5 = arith.constant dense<0.000000e+00> : vector<32x128xf32>
    %9 = tpu.matmul %8, %5, %cst_5 {dimension_numbers = #tpu.dot_dimension_numbers<[1], [0], [0], [1], [0, 0, 1, 1], [], []>, precision = #tpu.contract_precision<fp32>} : vector<32x8xf32>, vector<8x128xf32>, vector<32x128xf32> -> vector<32x128xf32>
    %c0_6 = arith.constant 0 : index
    %c0_7 = arith.constant 0 : index
    %10 = vector.load %arg2[%c0_6, %c0_7] : memref<32x128xf32, #tpu.memory_space<vmem>>, vector<32x128xf32>
    %c0_8 = arith.constant 0 : index
    %c0_9 = arith.constant 0 : index
    %11 = vector.load %arg3[%c0_8, %c0_9] : memref<32x128xf32, #tpu.memory_space<vmem>>, vector<32x128xf32>
    %c0_10 = arith.constant 0 : index
    %c0_11 = arith.constant 0 : index
    %12 = vector.load %arg4[%c0_10, %c0_11] : memref<32x128xf32, #tpu.memory_space<vmem>>, vector<32x128xf32>
    %c0_12 = arith.constant 0 : index
    %c0_13 = arith.constant 0 : index
    %13 = vector.load %arg5[%c0_12, %c0_13] : memref<32x128xf32, #tpu.memory_space<vmem>>, vector<32x128xf32>
    %14 = arith.mulf %10, %7 : vector<32x128xf32>
    %15 = arith.mulf %11, %9 : vector<32x128xf32>
    %16 = arith.subf %14, %15 : vector<32x128xf32>
    %17 = arith.mulf %16, %12 : vector<32x128xf32>
    %18 = arith.mulf %10, %9 : vector<32x128xf32>
    %19 = arith.mulf %11, %7 : vector<32x128xf32>
    %20 = arith.addf %18, %19 : vector<32x128xf32>
    %21 = arith.mulf %20, %13 : vector<32x128xf32>
    %22 = arith.addf %17, %21 : vector<32x128xf32>
    %cst_14 = arith.constant dense<0.000000e+00> : vector<128xf32>
    %23 = vector.multi_reduction <add>, %22, %cst_14 [0] : vector<32x128xf32> to vector<128xf32>
    %24 = vector.shape_cast %23 : vector<128xf32> to vector<1x128xf32>
    %c0_15 = arith.constant 0 : index
    %c0_16 = arith.constant 0 : index
    %25 = vector.load %arg8[%c0_15, %c0_16] : memref<1x128xf32, #tpu.memory_space<vmem>>, vector<1x128xf32>
    tpu.vector_store %arg8[%c0_15, %c0_16], %24 {strides = array<i32>} : memref<1x128xf32, #tpu.memory_space<vmem>>, vector<1x128xf32>,
    return
  }
  func.func @transform_0(%arg0: i32) -> (i32, i32) {
    %c0_i32 = arith.constant 0 : i32
    %c0_i32_0 = arith.constant 0 : i32
    return %c0_i32, %arg0 : i32, i32
  }
  func.func @transform_1(%arg0: i32) -> (i32, i32) {
    %c0_i32 = arith.constant 0 : i32
    %c0_i32_0 = arith.constant 0 : i32
    return %c0_i32, %arg0 : i32, i32
  }
  func.func @transform_2(%arg0: i32) -> (i32, i32) {
    %c0_i32 = arith.constant 0 : i32
    %c0_i32_0 = arith.constant 0 : i32
    return %c0_i32, %arg0 : i32, i32
  }
  func.func @transform_3(%arg0: i32) -> (i32, i32) {
    %c0_i32 = arith.constant 0 : i32
    %c0_i32_0 = arith.constant 0 : i32
    return %c0_i32, %arg0 : i32, i32
  }
  func.func @transform_4(%arg0: i32) -> (i32, i32) {
    %c0_i32 = arith.constant 0 : i32
    %c0_i32_0 = arith.constant 0 : i32
    return %c0_i32, %arg0 : i32, i32
  }
  func.func @transform_5(%arg0: i32) -> (i32, i32) {
    %c0_i32 = arith.constant 0 : i32
    %c0_i32_0 = arith.constant 0 : i32
    %c0_i32_1 = arith.constant 0 : i32
    return %c0_i32, %c0_i32_0 : i32, i32
  }
  func.func @transform_6(%arg0: i32) -> (i32, i32) {
    %c0_i32 = arith.constant 0 : i32
    %c0_i32_0 = arith.constant 0 : i32
    %c0_i32_1 = arith.constant 0 : i32
    return %c0_i32, %c0_i32_0 : i32, i32
  }
  func.func @transform_7(%arg0: i32) -> (i32, i32) {
    %c0_i32 = arith.constant 0 : i32
    %c0_i32_0 = arith.constant 0 : i32
    return %c0_i32, %arg0 : i32, i32
  }
}

</mosaic_0001>

<bundles_post_ra>
// kernel: _complex_forward_impl.1
= control target key start
LH: loop header
LB: loop body
LE: loop exit
PB: predicated region body
PF: predicated region fallthrough
CT: control target
= control target key end

     0   :  { %v26_v0 = vlaneseq  ;;  %vm40_vm0 = vcmask 64512   ;;  %v1491_v19 = vmov 1.0   ;;  %v1492_v22 = vmov 0.0   ;;  %s1770_s0 = inlined_call_operand.vmem [shape: s32[1,128], index: 0, kind: input, shape index: {}]   ;;  %s1771_s5 = inlined_call_operand.vmem [shape: f32[32,8], index: 5, kind: input, shape index: {}]   ;;  %s1772_s6 = inlined_call_operand.vmem [shape: f32[32,8], index: 6, kind: input, shape index: {}]   ;;  %s1773_s1 = inlined_call_operand.vmem [shape: f32[32,128], index: 1, kind: input, shape index: {}]   ;;  %s1774_s2 = inlined_call_operand.vmem [shape: f32[32,128], index: 2, kind: input, shape index: {}]   ;;  %s1775_s3 = inlined_call_operand.vmem [shape: f32[32,128], index: 3, kind: input, shape index: {}]   ;;  %s1776_s4 = inlined_call_operand.vmem [shape: f32[32,128], index: 4, kind: input, shape index: {}]   ;;  %s1777_s7 = inlined_call_operand.vmem [shape: f32[1,128], index: 7, kind: output, shape index: {}]  }
   0x1   :  { %v1285_v1 = vld [vmem:[%s1770_s0] ss:$0 sm:$0xff]  ;;  %v37_v7 = vld [vmem:[%s1771_s5 + $0x8] sm:$0xff]  ;;  %v38_v9 = vld [vmem:[%s1771_s5 + $0x10] sm:$0xff] }
   0x2   :  { %v36_v2 = vld [vmem:[%s1771_s5] sm:$0xff]  ;;  %v27_v4 = vshrl.u32 %v26_v0, 7  ;;  %v629_v8 = vld [vmem:[%s1772_s6 + $0x8] sm:$0xff]  ;;  %v45_v12 = vsel %vm40_vm0, %v37_v7, 0  ;;  %v630_v14 = vld [vmem:[%s1772_s6 + $0x10] sm:$0xff]  ;;  %v48_v18 = vsel %vm40_vm0, %v38_v9, 0 }
   0x3   :  { %v628_v3 = vld [vmem:[%s1772_s6] sm:$0xff]  ;;  %v42_v5 = vsel %vm40_vm0, %v36_v2, 0  ;;  %v636_v13 = vsel %vm40_vm0, %v629_v8, 0  ;;  %v1566_v16 = vand.u32 4294901760, %v45_v12  ;;  %v1585_v24 = vand.u32 4294901760, %v48_v18  ;;  %v39_v25 = vld [vmem:[%s1771_s5 + $0x18] sm:$0xff] }
   0x4   :  { %v633_v6 = vsel %vm40_vm0, %v628_v3, 0  ;;  %v1553_v10 = vand.u32 4294901760, %v42_v5  ;;  %vm1562_vm1 = vcmp.eq.s32.totalorder %v27_v4, %v1285_v1  ;;  %v1568_v17 = vand.u32 4294901760, %v636_v13  ;;  %v631_v46 = vld [vmem:[%s1772_s6 + $0x18] sm:$0xff]  ;;  %v1220_v4 = vld [vmem:[%s1773_s1 + $0x8] sm:$0xff]  ;;  %v1219_v7 = vld [vmem:[%s1773_s1] sm:$0xff] }
   0x5   :  { %v1555_v11 = vand.u32 4294901760, %v633_v6  ;;  %1353 = vmatprep.subr.msk.mxu0 %vm1562_vm1, %v1491_v19  ;;  %1401 = vmatprep.subr.msk.mxu1 %vm1562_vm1, %v1491_v19  ;;  %v1286_v23 = vsel %vm1562_vm1, 1.0, %v1492_v22  ;;  %v1597_v26 = vsub.f32 %v45_v12, %v1566_v16  ;;  %v639_v29 = vsel %vm40_vm0, %v630_v14, 0  ;;  %v1223_v8 = vld [vmem:[%s1774_s2] sm:$0xff]  ;;  %v1222_v15 = vld [vmem:[%s1773_s1 + $0x18] sm:$0xff]  ;;  %v1225_v22 = vld [vmem:[%s1774_s2 + $0x10] sm:$0xff] }
   0x6   :  { %v1578_v20 = vsub.f32 %v42_v5, %v1553_v10  ;;  %1354 = vmatpush3.msk.msra.mxu0 %vm1562_vm1, %v1491_v19  ;;  %1402 = vmatpush3.msk.msra.mxu1 %vm1562_vm1, %v1491_v19  ;;  %v161_v27 = vsub.f32 %v1286_v23, %v1286_v23  ;;  %v1600_v28 = vsub.f32 %v636_v13, %v1568_v17  ;;  %v1608_v33 = vand.u32 4294901760, %v639_v29  ;;  %v1224_v5 = vld [vmem:[%s1774_s2 + $0x8] sm:$0xff] }
   0x7   :  { %v1581_v21 = vsub.f32 %v633_v6, %v1555_v11  ;;  %v1606_v32 = vsub.f32 %v48_v18, %v1585_v24  ;;  %v131_v34 = vand.u32 4294901760, %v1597_v26  ;;  %v51_v37 = vsel %vm40_vm0, %v39_v25, 0  ;;  %v1228_v23 = vld [vmem:[%s1775_s3 + $0x8] sm:$0xff] }
   0x8   :  { %v121_v30 = vand.u32 4294901760, %v1578_v20  ;;  %v1611_v35 = vand.u32 4294901760, %v161_v27  ;;  %v722_v36 = vand.u32 4294901760, %v1600_v28  ;;  %v1623_v41 = vsub.f32 %v639_v29, %v1608_v33  ;;  %v1227_v29 = vld [vmem:[%s1775_s3] sm:$0xff] }
   0x9   :  { %v712_v31 = vand.u32 4294901760, %v1581_v21  ;;  %v141_v40 = vand.u32 4294901760, %v1606_v32  ;;  %v132_v42 = vsub.f32 %v1597_v26, %v131_v34  ;;  %v1632_v45 = vand.u32 4294901760, %v51_v37 }
   0xa   :  { %v122_v38 = vsub.f32 %v1578_v20, %v121_v30  ;;  %v163_v43 = vsub.f32 %v161_v27, %v1611_v35  ;;  %v723_v44 = vsub.f32 %v1600_v28, %v722_v36  ;;  %v732_v50 = vand.u32 4294901760, %v1623_v41 }
   0xb   :  { %v713_v39 = vsub.f32 %v1581_v21, %v712_v31  ;;  %v142_v49 = vsub.f32 %v1606_v32, %v141_v40  ;;  %v133_v51 = vand.u32 4294901760, %v132_v42  ;;  %v150_v54 = vsub.f32 %v51_v37, %v1632_v45 }
   0xc   :  { %v123_v47 = vand.u32 4294901760, %v122_v38  ;;  %v164_v52 = vand.u32 4294901760, %v163_v43  ;;  %v724_v53 = vand.u32 4294901760, %v723_v44  ;;  %v733_v56 = vsub.f32 %v1623_v41, %v732_v50 }
   0xd   :  { %v714_v48 = vand.u32 4294901760, %v713_v39  ;;  %v143_v55 = vand.u32 4294901760, %v142_v49  ;;  %v642_v57 = vsel %vm40_vm0, %v631_v46, 0  ;;  %v151_v58 = vand.u32 4294901760, %v150_v54  ;;  %v1234_v46 = vld [vmem:[%s1776_s4 + $0x18] sm:$0xff] }
   0xe   :  { %1355 = vmatprep.mubr.f32.mxu0 %v123_v47  ;;  %1361 = vmatprep.subr.mxu0 %v164_v52  ;;  %v1646_v59 = vand.u32 4294901760, %v642_v57  ;;  %v734_v60 = vand.u32 4294901760, %v733_v56 }
   0xf   :  { %1403 = vmatprep.mubr.f32.mxu1 %v714_v48  ;;  %1356 = vmatmul.mubr.f32.vlgmr.msra.gmra.mrb[0].mxu0 %v133_v51  ;;  %v152_v61 = vsub.f32 %v150_v54, %v151_v58 }
  0x10   :  { %1404 = vmatmul.mubr.f32.vlgmr.msra.gmra.mrb[0].mxu1 %v724_v53  ;;  %1409 = vmatprep.subr.mxu1 %v164_v52  ;;  %v741_v62 = vsub.f32 %v642_v57, %v1646_v59  ;;  %v1233_v53 = vld [vmem:[%s1776_s4 + $0x10] sm:$0xff] }
  0x11   :  { %1362 = vmatpush3.msra.mxu0 %v164_v52  ;;  %1410 = vmatpush3.msra.mxu1 %v164_v52  ;;  %v153_v63 = vand.u32 4294901760, %v152_v61  ;;  %v1229_v52 = vld [vmem:[%s1775_s3 + $0x10] sm:$0xff] }
  0x12   :  { %1358 = vmatprep.mubr.f32.mxu0 %v143_v55  ;;  %1406 = vmatprep.mubr.f32.mxu1 %v734_v60  ;;  %v742_v0 = vand.u32 4294901760, %v741_v62 }
  0x13   :  { %1369 = vmatprep.subr.mxu0 %v161_v27  ;;  %1417 = vmatprep.subr.mxu1 %v161_v27 }
  0x14   :  { %1359 = vmatmul.mubr.f32.gmra.mrb[2].mxu0 %v153_v63  ;;  %v743_v1 = vsub.f32 %v741_v62, %v742_v0 }
  0x15   :  { %1363 = vmatprep.mubr.f32.mxu0 %v1553_v10 }
  0x16   :  { %v744_v2 = vand.u32 4294901760, %v743_v1 }
  0x18   :  { %1407 = vmatmul.mubr.f32.gmra.mrb[2].mxu1 %v744_v2  ;;  %1364 = vmatmul.mubr.f32.vlgmr.msra.gmra.mrb[0].mxu0 %v1566_v16 }
  0x19   :  { %1411 = vmatprep.mubr.f32.mxu1 %v1555_v11  ;;  %1370 = vmatpush3.msra.mxu0 %v161_v27 }
  0x1a   :  { %1366 = vmatprep.mubr.f32.mxu0 %v1585_v24  ;;  %1377 = vmatprep.subr.msk.mxu0 %vm1562_vm1, %v1491_v19 }
  0x1c   :  { %1412 = vmatmul.mubr.f32.vlgmr.msra.gmra.mrb[0].mxu1 %v1568_v17  ;;  %1367 = vmatmul.mubr.f32.gmra.mrb[2].mxu0 %v1632_v45 }
  0x1d   :  { %1418 = vmatpush3.msra.mxu1 %v161_v27  ;;  %1414 = vmatprep.mubr.f32.mxu1 %v1608_v33 }
  0x1e   :  { %1371 = vmatprep.mubr.f32.mxu0 %v1578_v20  ;;  %1425 = vmatprep.subr.msk.mxu1 %vm1562_vm1, %v1491_v19 }
  0x20   :  { %1415 = vmatmul.mubr.f32.gmra.mrb[2].mxu1 %v1646_v59  ;;  %1372 = vmatmul.mubr.f32.vlgmr.msra.gmra.mrb[0].mxu0 %v1597_v26 }
  0x21   :  { %1419 = vmatprep.mubr.f32.mxu1 %v1581_v21  ;;  %1378 = vmatpush3.msk.msra.mxu0 %vm1562_vm1, %v1491_v19  ;;  %v1221_v21 = vld [vmem:[%s1773_s1 + $0x10] sm:$0xff] }
  0x22   :  { %1374 = vmatprep.mubr.f32.mxu0 %v1606_v32  ;;  %1385 = vmatprep.subr.mxu0 %v1611_v35 }
  0x24   :  { %1420 = vmatmul.mubr.f32.vlgmr.msra.gmra.mrb[0].mxu1 %v1600_v28  ;;  %1375 = vmatmul.mubr.f32.gmra.mrb[2].mxu0 %v150_v54 }
  0x25   :  { %1426 = vmatpush3.msk.msra.mxu1 %vm1562_vm1, %v1491_v19  ;;  %1422 = vmatprep.mubr.f32.mxu1 %v1623_v41 }
  0x26   :  { %1379 = vmatprep.mubr.f32.mxu0 %v121_v30  ;;  %1433 = vmatprep.subr.mxu1 %v1611_v35  ;;  %v1231_v30 = vld [vmem:[%s1776_s4] sm:$0xff] }
  0x28   :  { %1423 = vmatmul.mubr.f32.gmra.mrb[2].mxu1 %v741_v62  ;;  %1380 = vmatmul.mubr.f32.vlgmr.msra.gmra.mrb[0].mxu0 %v131_v34 }
  0x29   :  { %1427 = vmatprep.mubr.f32.mxu1 %v712_v31  ;;  %1386 = vmatpush3.msra.mxu0 %v1611_v35 }
  0x2a   :  { %1382 = vmatprep.mubr.f32.mxu0 %v141_v40  ;;  %1393 = vmatprep.subr.msk.mxu0 %vm1562_vm1, %v1491_v19 }
  0x2c   :  { %1428 = vmatmul.mubr.f32.vlgmr.msra.gmra.mrb[0].mxu1 %v722_v36  ;;  %1383 = vmatmul.mubr.f32.gmra.mrb[2].mxu0 %v151_v58 }
  0x2d   :  { %1434 = vmatpush3.msra.mxu1 %v1611_v35  ;;  %1430 = vmatprep.mubr.f32.mxu1 %v732_v50 }
  0x2e   :  { %1387 = vmatprep.mubr.f32.mxu0 %v1553_v10  ;;  %1441 = vmatprep.subr.msk.mxu1 %vm1562_vm1, %v1491_v19 }
  0x30   :  { %1431 = vmatmul.mubr.f32.gmra.mrb[2].mxu1 %v742_v0  ;;  %1388 = vmatmul.mubr.f32.vlgmr.msra.gmra.mrb[0].mxu0 %v1566_v16 }
  0x31   :  { %1435 = vmatprep.mubr.f32.mxu1 %v1555_v11  ;;  %1394 = vmatpush3.msk.msra.mxu0 %vm1562_vm1, %v1491_v19 }
  0x32   :  { %1390 = vmatprep.mubr.f32.mxu0 %v1585_v24 }
  0x34   :  { %1436 = vmatmul.mubr.f32.vlgmr.msra.gmra.mrb[0].mxu1 %v1568_v17  ;;  %1391 = vmatmul.mubr.f32.gmra.mrb[2].mxu0 %v1632_v45 }
  0x35   :  { %1442 = vmatpush3.msk.msra.mxu1 %vm1562_vm1, %v1491_v19  ;;  %1438 = vmatprep.mubr.f32.mxu1 %v1608_v33 }
  0x36   :  { %1395 = vmatprep.mubr.f32.mxu0 %v1553_v10 }
  0x38   :  { %1439 = vmatmul.mubr.f32.gmra.mrb[2].mxu1 %v1646_v59  ;;  %1396 = vmatmul.mubr.f32.vlgmr.msra.gmra.mrb[0].mxu0 %v1566_v16  ;;  %v1226_v16 = vld [vmem:[%s1774_s2 + $0x18] sm:$0xff] }
  0x39   :  { %1443 = vmatprep.mubr.f32.mxu1 %v1555_v11  ;;  %1398 = vmatprep.mubr.f32.mxu0 %v1585_v24  ;;  %v1232_v24 = vld [vmem:[%s1776_s4 + $0x8] sm:$0xff] }
  0x3c   :  { %1444 = vmatmul.mubr.f32.vlgmr.msra.gmra.mrb[0].mxu1 %v1568_v17  ;;  %1399 = vmatmul.mubr.f32.gmra.mrb[2].mxu0 %v1632_v45  ;;  %v1230_v45 = vld [vmem:[%s1775_s3 + $0x18] sm:$0xff] }
  0x3d   :  { %1446 = vmatprep.mubr.f32.mxu1 %v1608_v33 }
  0x40   :  { %1447 = vmatmul.mubr.f32.gmra.mrb[2].mxu1 %v1646_v59 }
 0x10b   :  { %v1397_v3 = vpop.f32.mrb[0].mxu0 }
 0x10c   :  { %v606_v6 = vpop.f32.mrb[1].mxu0  ;;  %v1236_v9 = vmul.f32 %v1397_v3, %v1220_v4  ;;  %v1256_v10 = vmul.f32 %v1397_v3, %v1224_v5 }
 0x10d   :  { %v1235_v12 = vmul.f32 %v1219_v7, %v606_v6  ;;  %v1255_v13 = vmul.f32 %v1223_v8, %v606_v6 }
 0x10f   :  { %v1445_v11 = vpop.f32.mrb[0].mxu1  ;;  %v1400_v14 = vpop.f32.mrb[2].mxu0 }
 0x110   :  { %v1240_v17 = vmul.f32 %v1445_v11, %v1224_v5  ;;  %v1252_v18 = vmul.f32 %v1445_v11, %v1220_v4  ;;  %v1197_v19 = vpop.f32.mrb[1].mxu1  ;;  %v618_v20 = vpop.f32.mrb[3].mxu0  ;;  %v1238_v31 = vmul.f32 %v1400_v14, %v1222_v15  ;;  %v1258_v32 = vmul.f32 %v1400_v14, %v1226_v16 }
 0x111   :  { %v1239_v25 = vmul.f32 %v1223_v8, %v1197_v19  ;;  %v1251_v26 = vmul.f32 %v1219_v7, %v1197_v19  ;;  %v1237_v36 = vmul.f32 %v1221_v21, %v618_v20  ;;  %v1257_v37 = vmul.f32 %v1225_v22, %v618_v20 }
 0x112   :  { %v1244_v27 = vsub.f32 %v1236_v9, %v1240_v17  ;;  %v1260_v28 = vadd.f32 %v1256_v10, %v1252_v18 }
 0x113   :  { %v1243_v33 = vsub.f32 %v1235_v12, %v1239_v25  ;;  %v1259_v34 = vadd.f32 %v1255_v13, %v1251_v26  ;;  %v1448_v35 = vpop.f32.mrb[2].mxu1 }
 0x114   :  { %v1248_v38 = vmul.f32 %v1244_v27, %v1228_v23  ;;  %v1264_v39 = vmul.f32 %v1260_v28, %v1232_v24  ;;  %v1242_v40 = vmul.f32 %v1448_v35, %v1226_v16  ;;  %v1254_v41 = vmul.f32 %v1448_v35, %v1222_v15  ;;  %v1209_v42 = vpop.f32.mrb[3].mxu1 }
 0x115   :  { %v1247_v43 = vmul.f32 %v1243_v33, %v1227_v29  ;;  %v1263_v44 = vmul.f32 %v1259_v34, %v1231_v30  ;;  %v1241_v47 = vmul.f32 %v1225_v22, %v1209_v42  ;;  %v1253_v48 = vmul.f32 %v1221_v21, %v1209_v42 }
 0x116   :  { %v1268_v49 = vadd.f32 %v1264_v39, %v1248_v38  ;;  %v1246_v50 = vsub.f32 %v1238_v31, %v1242_v40  ;;  %v1262_v51 = vadd.f32 %v1258_v32, %v1254_v41 }
 0x117   :  { %v1267_v54 = vadd.f32 %v1263_v44, %v1247_v43  ;;  %v1245_v55 = vsub.f32 %v1237_v36, %v1241_v47  ;;  %v1261_v56 = vadd.f32 %v1257_v37, %v1253_v48 }
 0x118   :  { %v1250_v57 = vmul.f32 %v1246_v50, %v1230_v45  ;;  %v1266_v58 = vmul.f32 %v1262_v51, %v1234_v46 }
 0x119   :  { %v1271_v59 = vadd.f32 %v1268_v49, %v1267_v54  ;;  %v1249_v60 = vmul.f32 %v1245_v55, %v1229_v52  ;;  %v1265_v61 = vmul.f32 %v1261_v56, %v1233_v53 }
 0x11a   :  { %v1270_v62 = vadd.f32 %v1266_v58, %v1250_v57 }
 0x11b   :  { %v1269_v63 = vadd.f32 %v1265_v61, %v1249_v60 }
 0x11d   :  { %v1272_v0 = vadd.f32 %v1271_v59, %v1269_v63 }
 0x11f   :  { %v1273_v1 = vadd.f32 %v1272_v0, %v1270_v62 }
 0x121   :  { %v1274_v2 = vrot.slane %v1273_v1, 4 }
 0x123   :  { %v1275_v3 = vadd.f32 %v1274_v2, %v1273_v1 }
 0x125   :  { %v1276_v4 = vrot.slane %v1275_v3, 2 }
 0x127   :  { %v1277_v5 = vadd.f32 %v1276_v4, %v1275_v3 }
 0x129   :  { %v1278_v6 = vrot.slane %v1277_v5, 1 }
 0x12b   :  { %v1279_v7 = vadd.f32 %v1278_v6, %v1277_v5 }
 0x12d   :  { %1280 = vst [vmem:[%s1777_s7] sm:$0x1] %v1279_v7 }

</bundles_post_ra>
